<compile_context>
chip_gen: v7x
topology: tpu7x:2x2x1
jax: 0.10.0
libtpu: 0.0.40
codegen_flags: <defaults>
</compile_context>

<pallas_src>
import math

import jax
import jax.numpy as jnp
from jax.experimental import pallas as pl
from jax.experimental.pallas import tpu as pltpu


def _scale_kernel(x_ref, s_ref, o_ref):
    # x_ref: (tm, Df) tile, s_ref: (1, Df) scale row -> broadcast multiply (VPU).
    o_ref[...] = x_ref[...] * s_ref[...]


def _round_up(a, b):
    return (a + b - 1) // b * b


def _hw_defaults():
    """(target_block_bytes, vmem_limit_bytes, physical_vmem) per TPU generation."""
    try:
        info = pltpu.get_tpu_info()
        vmem_cap = int(getattr(info, "vmem_capacity_bytes", 128 << 20))
    except Exception:  # not on TPU / API unavailable -> conservative defaults
        vmem_cap = 128 << 20
    if vmem_cap <= (96 << 20):
        # v7x-class: 64 MiB VMEM/TC but ~3.2 TB/s HBM -> bigger blocks to
        # amortize the ~0.35us per-grid-step overhead; keep headroom under 64.
        return (8 << 20), (44 << 20), vmem_cap
    # v5e/v6e: 128 MiB physical VMEM. Set the limit explicitly — v5e's default
    # scoped limit is 16 MiB, which double-buffered 4 MiB blocks would exceed.
    return (4 << 20), (40 << 20), vmem_cap


def _choose_lane_fold(M, dim):
    """Pick k so the folded lane width k*dim is a (wide) multiple of 128.

    We never give up lane density when M % k != 0: the caller folds the first
    (M // k) * k rows and handles the tiny (<k rows) remainder with plain XLA.
    """
    k = 128 // math.gcd(dim, 128)  # minimal k making (k*dim) % 128 == 0
    if k > M:
        return 1                   # tiny input: one masked block is fine
    if M % k == 0:
        # Widen while it still divides M exactly (no remainder at all).
        while k * dim < 1024 and M % (2 * k) == 0:
            k *= 2
    else:
        # Remainder unavoidable; widen for lane density anyway (remainder
        # stays < k rows -> negligible XLA tail).
        while k * dim < 1024 and 2 * k <= M:
            k *= 2
    return k


def _pick_row_tile(Mf, Df, itemsize, target_block_bytes, row_align):
    """Rows per block: big (amortize per-step overhead), aligned, and ideally a
    divisor of Mf (no ragged final block). Capped so the grid has >= 2 steps
    when possible, so v7x's two TensorCores both get work."""
    rows_target = target_block_bytes // (Df * itemsize)
    rows_target = max(row_align, (rows_target // row_align) * row_align)
    # At least 2 grid steps when rows allow it (v7x megacore split).
    half = _round_up(-(-Mf // 2), row_align)
    rows_target = min(rows_target, max(row_align, half))
    if Mf <= rows_target:
        return Mf                   # single full-extent block (always legal)
    # Prefer an aligned divisor of Mf near the target: every block is full, so
    # every store in the kernel is an unmasked full-width vst.
    lo = max(row_align, rows_target // 2)
    t = rows_target
    while t >= lo:
        if Mf % t == 0:
            return t
        t -= row_align
    # No nice divisor: Pallas masks only the final partial block's writeback
    # (no wrapper-side padding or extra HBM passes).
    return rows_target


def scale_forward(x, scale, *, target_block_bytes=None, vmem_limit_bytes=None):
    """Apply x * scale with scale broadcast over the last axis, via Pallas."""
    orig_shape = x.shape
    dim = orig_shape[-1]
    assert scale.shape == (dim,), f"scale must have shape ({dim},)"

    # Single same-dtype vmul per vreg (no promote/narrow inside the kernel).
    scale = scale.astype(x.dtype)

    x2d = x.reshape(-1, dim)
    M = x2d.shape[0]
    if M == 0:
        return x

    blk_default, vmem_default, vmem_cap = _hw_defaults()
    if target_block_bytes is None:
        target_block_bytes = blk_default
    if vmem_limit_bytes is None:
        vmem_limit_bytes = vmem_default

    # ---- lane folding: make the lane (last) dim a wide multiple of 128 ----
    k = _choose_lane_fold(M, dim)
    M_bulk = (M // k) * k
    rem = M - M_bulk                 # < k rows; handled outside the kernel

    x_bulk = x2d if rem == 0 else x2d[:M_bulk]
    Mf = M_bulk // k
    Df = k * dim
    xf = x_bulk.reshape(Mf, Df)
    sf = (scale if k == 1 else jnp.tile(scale, (k,))).reshape(1, Df)

    itemsize = jnp.dtype(x.dtype).itemsize
    row_align = max(8, 32 // itemsize)  # sublane packing: f32=8, bf16=16, int8=32
    tm = _pick_row_tile(Mf, Df, itemsize, target_block_bytes, row_align)
    grid_m = pl.cdiv(Mf, tm)

    # x-in + out blocks double-buffered, + scale + headroom; capped at physical.
    block_bytes = tm * Df * itemsize
    vmem_limit_bytes = min(max(vmem_limit_bytes, 4 * block_bytes + (2 << 20)),
                           vmem_cap)

    out_f = pl.pallas_call(
        _scale_kernel,
        out_shape=jax.ShapeDtypeStruct((Mf, Df), x.dtype),
        grid_spec=pltpu.PrefetchScalarGridSpec(
            num_scalar_prefetch=0,
            grid=(grid_m,),
            in_specs=[
                pl.BlockSpec((tm, Df), lambda i: (i, 0)),   # streamed x tile
                pl.BlockSpec((1, Df), lambda i: (0, 0)),    # resident scale row
            ],
            out_specs=pl.BlockSpec((tm, Df), lambda i: (i, 0)),
        ),
        compiler_params=pltpu.CompilerParams(
            dimension_semantics=("parallel",),
            vmem_limit_bytes=vmem_limit_bytes,
        ),
        cost_estimate=pl.CostEstimate(
            flops=M_bulk * dim,
            bytes_accessed=2 * M_bulk * dim * itemsize + Df * itemsize,
            transcendentals=0,
        ),
    )(xf, sf)

    out2d = out_f.reshape(M_bulk, dim)
    if rem:
        # Rare ragged tail (< k rows): tiny plain-XLA multiply, keeping the
        # bulk lane-dense; far cheaper than padding the whole slab.
        out2d = jnp.concatenate([out2d, x2d[M_bulk:] * scale], axis=0)
    return out2d.reshape(orig_shape)


class ScalePallas:
    """JAX/Pallas counterpart of the PyTorch Scale module (forward only)."""

    def __init__(self, dim, init_value=1.0, dtype=jnp.float32):
        # Deterministic init, matching `init_value * torch.ones(dim)`.
        self.scale = init_value * jnp.ones((dim,), dtype=dtype)

    def __call__(self, x):
        return scale_forward(x, self.scale)


if __name__ == "__main__":
    key = jax.random.PRNGKey(0)

    # Small channels-last input: (B, H, W, C) = (2, 8, 8, 32); dim=32 exercises
    # the lane-folding path (32 -> folded to a 1024-wide lane-dense slab).
    B, H, W, C = 2, 8, 8, 32
    x = jax.random.normal(key, (B, H, W, C), dtype=jnp.float32)
    module = ScalePallas(dim=C, init_value=0.5)
    out = jax.block_until_ready(module(x))
    ref = x * module.scale
    assert out.shape == x.shape and out.dtype == x.dtype
    assert jnp.allclose(out, ref, atol=1e-6, rtol=1e-6)

    # bf16 input, M = 2*14*14 = 392, dim=96: exercises dtype cast, k=8 folding,
    # and a ragged final row-block handled by Pallas masking (no pad/slice).
    x2 = jax.random.normal(jax.random.PRNGKey(1), (2, 14, 14, 96), dtype=jnp.bfloat16)
    mod2 = ScalePallas(dim=96, init_value=1.5)
    out2 = jax.block_until_ready(mod2(x2))
    ref2 = x2 * mod2.scale.astype(jnp.bfloat16)
    assert out2.shape == x2.shape and out2.dtype == x2.dtype
    assert jnp.allclose(out2.astype(jnp.float32), ref2.astype(jnp.float32),
                        atol=1e-2, rtol=1e-2)

    # dim=48, M = 2*5*5 = 50: M is not a multiple of the lane-fold factor, so
    # this exercises the lane-dense bulk + tiny XLA remainder path.
    x3 = jax.random.normal(jax.random.PRNGKey(2), (2, 5, 5, 48), dtype=jnp.float32)
    mod3 = ScalePallas(dim=48, init_value=-0.25)
    out3 = jax.block_until_ready(mod3(x3))
    ref3 = x3 * mod3.scale
    assert out3.shape == x3.shape and out3.dtype == x3.dtype
    assert jnp.allclose(out3, ref3, atol=1e-6, rtol=1e-6)

    print("KERNEL_OK")
</pallas_src>

<mosaic_0001>
module attributes {stable_mosaic.version = 11 : i64} {
  func.func @_scale_kernel(%arg0: i32, %arg1: memref<4x1024xf32, #tpu.memory_space<vmem>>, %arg2: memref<1x1024xf32, #tpu.memory_space<vmem>>, %arg3: memref<4x1024xf32, #tpu.memory_space<vmem>>) attributes {dimension_semantics = [#tpu.dimension_semantics<parallel>], iteration_bounds = array<i64: 1>, scalar_prefetch = 0 : i64, scratch_operands = 0 : i64, tpu.core_type = #tpu.core_type<tc>, window_params = [{transform_indices = @transform_0, window_bounds = array<i64: 4, 1024>}, {pipeline_mode = #tpu.pipeline_mode<synchronous>, transform_indices = @transform_1, window_bounds = array<i64: 1, 1024>}, {transform_indices = @transform_2, window_bounds = array<i64: 4, 1024>}]} {
    %c0 = arith.constant 0 : index
    %c0_0 = arith.constant 0 : index
    %0 = vector.load %arg1[%c0, %c0_0] : memref<4x1024xf32, #tpu.memory_space<vmem>>, vector<4x1024xf32>
    %c0_1 = arith.constant 0 : index
    %c0_2 = arith.constant 0 : index
    %1 = vector.load %arg2[%c0_1, %c0_2] : memref<1x1024xf32, #tpu.memory_space<vmem>>, vector<1x1024xf32>
    %2 = vector.broadcast %1 : vector<1x1024xf32> to vector<4x1024xf32>
    %3 = arith.mulf %0, %2 : vector<4x1024xf32>
    %c0_3 = arith.constant 0 : index
    %c0_4 = arith.constant 0 : index
    %4 = vector.load %arg3[%c0_3, %c0_4] : memref<4x1024xf32, #tpu.memory_space<vmem>>, vector<4x1024xf32>
    tpu.vector_store %arg3[%c0_3, %c0_4], %3 {strides = array<i32>} : memref<4x1024xf32, #tpu.memory_space<vmem>>, vector<4x1024xf32>,
    return
  }
  func.func @transform_0(%arg0: i32) -> (i32, i32) {
    %c0_i32 = arith.constant 0 : i32
    %c0_i32_0 = arith.constant 0 : i32
    return %arg0, %c0_i32 : i32, i32
  }
  func.func @transform_1(%arg0: i32) -> (i32, i32) {
    %c0_i32 = arith.constant 0 : i32
    %c0_i32_0 = arith.constant 0 : i32
    %c0_i32_1 = arith.constant 0 : i32
    return %c0_i32, %c0_i32_0 : i32, i32
  }
  func.func @transform_2(%arg0: i32) -> (i32, i32) {
    %c0_i32 = arith.constant 0 : i32
    %c0_i32_0 = arith.constant 0 : i32
    return %arg0, %c0_i32 : i32, i32
  }
}

</mosaic_0001>

<bundles_post_ra>
// kernel: tpu_custom_call.1
= control target key start
LH: loop header
LB: loop body
LE: loop exit
PB: predicated region body
PF: predicated region fallthrough
CT: control target
= control target key end

     0   :  { %7 = vsyncpa [#allocation3], 0  ;;  %s235_s0 = inlined_call_operand.hbm [shape: f32[4,1024], index: 0, kind: input, shape index: {}]   ;;  %s236_s1 = inlined_call_operand.hbm [shape: f32[1,1024], index: 1, kind: input, shape index: {}]   ;;  %s237_s2 = inlined_call_operand.hbm [shape: f32[4,1024], index: 2, kind: output, shape index: {}]  }
   0x1   :  { %8 = vsyncpa [#allocation6], 0 }
   0x2   :  { %9 = vsyncpa [#allocation4], 0  ;;  %s181_s9 = smov [#allocation2]   ;;  %s182_s11 = smov [#allocation5]  }
   0x3   :  { %s16_s10 = sshll.u32 %s181_s9, 4  ;;  %s26_s12 = sshll.u32 %s182_s11, 4  ;;  %s17_s10 = int_to_ptr.vmem [resolvable:$true] %s16_s10  ;;  %s27_s12 = int_to_ptr.vmem [resolvable:$true] %s26_s12 }
   0x4   :  { %s109_s15 = scalar_lea.hbm %s235_s0, 512 }
   0x5   :  { %p110_p0 = scmp.ne.s32.totalorder %s235_s0, %s109_s15  ;;  %p113_p1 = scmp.lt.u32.totalorder %s109_s15, %s235_s0 }
   0x7   :  { %p115_p2 = pnand %p113_p1, %p110_p0 }
   0x9   :  { %118 = shalt.err (!%p115_p2)
}
   0xa   :  { %s119_s20 = scalar_lea.vmem %s17_s10, 512  ;;  %p124_p4 = scmp.lt.s32.totalorder %s17_s10, %s17_s10 }
   0xb   :  { %p120_p3 = scmp.ne.s32.totalorder %s17_s10, %s119_s20  ;;  %p125_p5 = scmp.lt.s32.totalorder %s119_s20, %s119_s20 }
   0xd   :  { %p126_p6 = por %p125_p5, %p124_p4 }
   0xf   :  { %p127_p7 = pnand %p126_p6, %p120_p3 }
  0x11   :  { %130 = shalt.err (!%p127_p7)
}
  0x12   :  { %19 = dma.hbm_to_vmem [thread:$0]  %s235_s0, 512, %s17_s10, [#allocation3]  }
  0x13   :  { %s131_s25 = scalar_lea.hbm %s236_s1, 128 }
  0x14   :  { %p132_p8 = scmp.ne.s32.totalorder %s236_s1, %s131_s25  ;;  %p135_p9 = scmp.lt.u32.totalorder %s131_s25, %s236_s1 }
  0x16   :  { %p137_p10 = pnand %p135_p9, %p132_p8 }
  0x18   :  { %140 = shalt.err (!%p137_p10)
}
  0x19   :  { %s141_s30 = scalar_lea.vmem %s27_s12, 128  ;;  %p146_p12 = scmp.lt.s32.totalorder %s27_s12, %s27_s12 }
  0x1a   :  { %p142_p11 = scmp.ne.s32.totalorder %s27_s12, %s141_s30  ;;  %p147_p13 = scmp.lt.s32.totalorder %s141_s30, %s141_s30 }
  0x1c   :  { %p148_p0 = por %p147_p13, %p146_p12 }
  0x1e   :  { %p149_p1 = pnand %p148_p0, %p142_p11 }
  0x20   :  { %152 = shalt.err (!%p149_p1)
}
  0x21   :  { %29 = dma.hbm_to_vmem [thread:$0]  %s236_s1, 128, %s27_s12, [#allocation6]  }
  0x22   :  { %175 = dma.done.wait [#allocation3], 512  }
  0x23   :  { %176 = vsyncadd [#allocation3], 4294966784 }
  0x24   :  { %177 = dma.done.wait [#allocation6], 128  }
  0x25   :  { %178 = vsyncadd [#allocation6], 4294967168  ;;  %v42_v0 = vlaneseq  ;;  %v40_v10 = vld [vmem:[#allocation5] sm:$0xff]  ;;  %v37_v16 = vld [vmem:[#allocation2 + $0x8] sm:$0xff]  ;;  %s183_s1 = smov [#allocation7]  }
  0x26   :  { %v36_v15 = vld [vmem:[#allocation2] sm:$0xff]  ;;  %v38_v23 = vld [vmem:[#allocation2 + $0x10] sm:$0xff]  ;;  %v39_v24 = vld [vmem:[#allocation2 + $0x18] sm:$0xff]  ;;  %s96_s4 = sshll.u32 %s183_s1, 4  ;;  %s97_s4 = int_to_ptr.vmem [resolvable:$true] %s96_s4 }
  0x27   :  { %v43_v1 = vshrl.u32 %v42_v0, 7  ;;  %s153_s5 = scalar_lea.vmem %s97_s4, 512  ;;  %p158_p3 = scmp.lt.s32.totalorder %s97_s4, %s97_s4 }
  0x28   :  { %p154_p2 = scmp.ne.s32.totalorder %s97_s4, %s153_s5  ;;  %p159_p4 = scmp.lt.s32.totalorder %s153_s5, %s153_s5 }
  0x29   :  { %v44_v2 = vsub.s32 0, %v43_v1  ;;  %v48_v3 = vsub.s32 1, %v43_v1  ;;  %v52_v4 = vsub.s32 2, %v43_v1  ;;  %v56_v5 = vsub.s32 3, %v43_v1 }
  0x2a   :  { %v60_v6 = vsub.s32 4, %v43_v1  ;;  %v64_v7 = vsub.s32 5, %v43_v1  ;;  %v68_v8 = vsub.s32 6, %v43_v1  ;;  %v72_v9 = vsub.s32 7, %v43_v1  ;;  %p160_p5 = por %p159_p4, %p158_p3 }
  0x2b   :  { %v45_v11 = vrot.slane %v40_v10, %v44_v2  ;;  %v49_v12 = vrot.slane %v40_v10, %v48_v3  ;;  %v53_v13 = vrot.slane %v40_v10, %v52_v4  ;;  %v57_v14 = vrot.slane %v40_v10, %v56_v5 }
  0x2c   :  { %v61_v17 = vrot.slane %v40_v10, %v60_v6  ;;  %v65_v18 = vrot.slane %v40_v10, %v64_v7  ;;  %v69_v19 = vrot.slane %v40_v10, %v68_v8  ;;  %v73_v20 = vrot.slane %v40_v10, %v72_v9  ;;  %p161_p6 = pnand %p160_p5, %p154_p2 }
  0x2d   :  { %v74_v21 = vcombine.low %v45_v11, %v49_v12  ;;  %v75_v22 = vcombine.low %v53_v13, %v57_v14 }
  0x2e   :  { %v76_v25 = vcombine.low %v61_v17, %v65_v18  ;;  %v77_v26 = vcombine.low %v69_v19, %v73_v20 }
  0x2f   :  { %v82_v27 = vmul.f32 %v74_v21, %v36_v15  ;;  %v83_v28 = vmul.f32 %v75_v22, %v37_v16 }
  0x30   :  { %v84_v29 = vmul.f32 %v76_v25, %v38_v23  ;;  %v85_v30 = vmul.f32 %v77_v26, %v39_v24 }
  0x31   :  { %86 = vst [vmem:[#allocation7] sm:$0xff] %v82_v27  ;;  %87 = vst [vmem:[#allocation7 + $0x8] sm:$0xff] %v83_v28 }
  0x32   :  { %88 = vst [vmem:[#allocation7 + $0x10] sm:$0xff] %v84_v29  ;;  %89 = vst [vmem:[#allocation7 + $0x18] sm:$0xff] %v85_v30 }
  0x33   :  { %164 = shalt.err (!%p161_p6)
}
  0x34   :  { %s165_s8 = scalar_lea.hbm %s237_s2, 512 }
  0x35   :  { %p166_p7 = scmp.ne.s32.totalorder %s237_s2, %s165_s8  ;;  %p169_p8 = scmp.lt.u32.totalorder %s165_s8, %s237_s2 }
  0x37   :  { %p171_p9 = pnand %p169_p8, %p166_p7 }
  0x39   :  { %174 = shalt.err (!%p171_p9)
}
  0x3a   :  { %99 = dma.vmem_to_hbm [thread:$0]  %s97_s4, 512, %s237_s2, [#allocation4]  }
  0x3b   :  { %179 = dma.done.wait [#allocation4], 512  }
  0x3c   :  { %180 = vsyncadd [#allocation4], 4294966784 }
  0x3d   :  { %103 = vsyncpa [#allocation3], 1 }
  0x3e   :  { %104 = vsyncpa [#allocation6], 1 }
  0x3f   :  { %105 = vsyncpa [#allocation4], 1 }

</bundles_post_ra>
